<compile_context>
chip_gen: v7x
topology: tpu7x:2x2x1
jax: 0.10.0
libtpu: 0.0.40
codegen_flags: <defaults>
</compile_context>

<pallas_src>
import jax
import jax.numpy as jnp
from jax.experimental import pallas as pl
from jax.experimental.pallas import tpu as pltpu

BN_EPS = 1e-5
LANE = 128


def _round_up(x, m):
    return (x + m - 1) // m * m


def _vmem_limit_bytes():
    # v5e/v6e have 128 MiB physical VMEM, v7x has 64 MiB; leave headroom.
    try:
        cap = pltpu.get_tpu_info().vmem_capacity_bytes
    except Exception:
        cap = 64 * 1024 * 1024
    return min(int(cap * 3 // 4), 100 * 1024 * 1024)


def _pick_row_tile(rows, kpad, npad, vmem_limit):
    """Row tile (multiple of 8) sized from the VMEM budget, minimizing the
    combined cost of tail padding + per-grid-step overhead."""
    rows8 = _round_up(rows, 8)
    budget = int(vmem_limit * 0.8)
    fixed = 2 * kpad * npad * 2                          # double-buffered bf16 weights
    per_row = 2 * kpad * 2 + 2 * npad * 2 + npad * 4     # LHS dbuf + y dbuf + f32 temp
    tm_cap = (budget - fixed) // per_row
    start = 16 if rows8 >= 16 else 8                     # bf16 sublane-pack friendly
    tm_cap = max(start, min(tm_cap, 2048, rows8) // 8 * 8)
    overhead_rows = 128                                  # ~0.35us/step in row-equivalents
    best_tm, best_score = start, None
    for tm in range(start, tm_cap + 1, 8):
        steps = -(-rows8 // tm)
        score = steps * tm + overhead_rows * steps       # padded rows + step overhead
        if best_score is None or score < best_score or (
                score == best_score and tm > best_tm):
            best_score, best_tm = score, tm
    return best_tm


def _pad2d(a, rows, cols):
    r, c = a.shape
    return jnp.pad(a, ((0, rows - r), (0, cols - c)))


# ----------------------------- Pallas kernels ------------------------------ #

def _matmul_stats_kernel(x_ref, w_ref, y_ref, sum_ref, sq_ref):
    """Conv-as-matmul (bf16 MXU operands, f32 accumulation) + per-block
    partial BN sum / sum-of-squares; output stored as bf16."""
    y = jnp.dot(x_ref[...], w_ref[...], preferred_element_type=jnp.float32)
    y_ref[...] = y.astype(y_ref.dtype)
    tm, npad = y.shape
    yg = y.reshape(tm // 8, 8, npad)                     # tile-aligned split
    sum_ref[...] = jnp.sum(yg, axis=0, keepdims=True)
    sq_ref[...] = jnp.sum(yg * yg, axis=0, keepdims=True)


def _bn_res_relu_kernel(y_ref, sc_ref, sh_ref, r_ref, rsc_ref, rsh_ref, o_ref):
    """out = relu(bn2(y) + bn_ds(residual-raw)), per row tile."""
    y = y_ref[...].astype(jnp.float32) * sc_ref[...] + sh_ref[...]
    r = r_ref[...].astype(jnp.float32) * rsc_ref[...] + rsh_ref[...]
    o_ref[...] = jnp.maximum(y + r, 0.0)


# --------------------------- pallas_call wrappers --------------------------- #

def _conv_stats(xcol_bf16, w_bf16, tm, vmem_limit):
    rows_pad, kpad = xcol_bf16.shape
    npad = w_bf16.shape[1]
    grid = rows_pad // tm
    return pl.pallas_call(
        _matmul_stats_kernel,
        out_shape=(jax.ShapeDtypeStruct((rows_pad, npad), jnp.bfloat16),
                   jax.ShapeDtypeStruct((grid, 8, npad), jnp.float32),
                   jax.ShapeDtypeStruct((grid, 8, npad), jnp.float32)),
        grid=(grid,),
        in_specs=[pl.BlockSpec((tm, kpad), lambda i: (i, 0)),
                  pl.BlockSpec((kpad, npad), lambda i: (0, 0))],
        out_specs=(pl.BlockSpec((tm, npad), lambda i: (i, 0)),
                   pl.BlockSpec((1, 8, npad), lambda i: (i, 0, 0)),
                   pl.BlockSpec((1, 8, npad), lambda i: (i, 0, 0))),
        compiler_params=pltpu.CompilerParams(
            dimension_semantics=("parallel",),   # per-block stat partials -> megacore OK
            vmem_limit_bytes=vmem_limit),
    )(xcol_bf16, w_bf16)


def _bn_res_relu(y, sc, sh, res, res_blk, rsc, rsh, tm, vmem_limit):
    rows_pad, cpad = y.shape
    grid = rows_pad // tm
    return pl.pallas_call(
        _bn_res_relu_kernel,
        out_shape=jax.ShapeDtypeStruct((rows_pad, cpad), jnp.float32),
        grid=(grid,),
        in_specs=[pl.BlockSpec((tm, cpad), lambda i: (i, 0)),
                  pl.BlockSpec((1, cpad), lambda i: (0, 0)),
                  pl.BlockSpec((1, cpad), lambda i: (0, 0)),
                  # residual may live in the 2nd 128-lane block of the fused
                  # conv1 output -> select it via the block index, no HBM copy.
                  pl.BlockSpec((tm, cpad), lambda i, b=res_blk: (i, b)),
                  pl.BlockSpec((1, cpad), lambda i: (0, 0)),
                  pl.BlockSpec((1, cpad), lambda i: (0, 0))],
        out_specs=pl.BlockSpec((tm, cpad), lambda i: (i, 0)),
        compiler_params=pltpu.CompilerParams(
            dimension_semantics=("parallel",),
            vmem_limit_bytes=vmem_limit),
    )(y, sc, sh, res, rsc, rsh)


# ------------------------------- glue (JAX) -------------------------------- #

def _bn_scale_shift(s, sq, gamma, beta, n_valid, cout, cpad):
    # Fold training-mode batch statistics + affine into one per-channel FMA.
    # TODO(synk): E[y^2]-E[y]^2 in f32 can cancel for huge N*Ho*Wo with large
    #             means; switch to Welford-merged per-block partials if needed.
    mu = s / n_valid
    var = jnp.maximum(sq / n_valid - mu * mu, 0.0)
    # Padded channels get gamma = beta = 0 so they stay exactly 0 after the FMA
    # (do not change this padding without masking the rsqrt blow-up).
    g = jnp.pad(gamma, (0, cpad - cout))
    b = jnp.pad(beta, (0, cpad - cout))
    scale = g * jax.lax.rsqrt(var + BN_EPS)
    shift = b - mu * scale
    return scale.reshape(1, cpad), shift.reshape(1, cpad)


def _im2col(x_nhwc, ksize, stride, padding):
    """Extract conv patches -> (N*Ho*Wo, K*K*C), Ho, Wo.
    TODO(synk): move in-kernel (halo DMA) to avoid the K*K HBM expansion."""
    n, h, w, c = x_nhwc.shape
    xp = jnp.pad(x_nhwc, ((0, 0), (padding, padding), (padding, padding), (0, 0)))
    ho = (h + 2 * padding - ksize) // stride + 1
    wo = (w + 2 * padding - ksize) // stride + 1
    cols = []
    for kh in range(ksize):
        for kw in range(ksize):
            cols.append(
                xp[:, kh:kh + stride * (ho - 1) + 1:stride,
                      kw:kw + stride * (wo - 1) + 1:stride, :])
    col = jnp.concatenate(cols, axis=-1)                 # (N, Ho, Wo, K*K*C)
    return col.reshape(n * ho * wo, ksize * ksize * c), ho, wo


def basic_block_forward(x_nchw, params, *, kernel_size, stride, padding):
    n, cin, h, w = x_nchw.shape
    cout = params["w1"].shape[0]
    cpad = _round_up(cout, LANE)
    vmem_limit = _vmem_limit_bytes()
    x = jnp.transpose(x_nchw, (0, 2, 3, 1)).astype(jnp.bfloat16)       # NHWC bf16

    # ---- conv1 patches (JAX-side im2col, bf16) ----
    xcol1, ho, wo = _im2col(x, kernel_size, stride, padding)
    rows = n * ho * wo
    k1 = xcol1.shape[1]
    k1pad = _round_up(k1, LANE)
    k2pad = _round_up(kernel_size * kernel_size * cout, LANE)

    # Fuse the 1x1 downsample conv into conv1's matmul when its strided input
    # sample coincides with conv1's centre tap ("same"-style convs).
    fuse_ds = (stride > 1 and kernel_size % 2 == 1
               and padding == kernel_size // 2)
    npad1 = 2 * cpad if fuse_ds else cpad

    tm = _pick_row_tile(rows, max(k1pad, k2pad), max(npad1, cpad), vmem_limit)
    rows_pad = _round_up(rows, tm)

    w1col = jnp.transpose(params["w1"], (2, 3, 1, 0)).reshape(k1, cout)
    if fuse_ds:
        wcomb = jnp.zeros((k1pad, npad1), jnp.float32)
        wcomb = wcomb.at[:k1, :cout].set(w1col)
        ctr = (padding * kernel_size + padding) * cin                  # centre tap rows
        wds = params["wds"][:, :, 0, 0].T                              # (Cin, Cout)
        wcomb = wcomb.at[ctr:ctr + cin, cpad:cpad + cout].set(wds)
        w1_p = wcomb.astype(jnp.bfloat16)
    else:
        w1_p = _pad2d(w1col, k1pad, cpad).astype(jnp.bfloat16)

    xcol1_p = _pad2d(xcol1, rows_pad, k1pad)
    y1c, s1, q1 = _conv_stats(xcol1_p, w1_p, tm, vmem_limit)
    ssum1 = jnp.sum(s1, axis=(0, 1))
    ssq1 = jnp.sum(q1, axis=(0, 1))
    sc1, sh1 = _bn_scale_shift(ssum1[:cpad], ssq1[:cpad],
                               params["g1"], params["b1"], rows, cout, cpad)

    # ---- residual path (raw conv output + folded BN; applied in pass B) ----
    if fuse_ds:
        rsc, rsh = _bn_scale_shift(ssum1[cpad:], ssq1[cpad:],
                                   params["gds"], params["bds"], rows, cout, cpad)
        res_arr, res_blk = y1c, 1            # residual = 2nd lane block of y1c
    elif stride > 1:
        xds = x[:, 0:stride * (ho - 1) + 1:stride,
                   0:stride * (wo - 1) + 1:stride, :].reshape(rows, cin)
        kdpad = _round_up(cin, LANE)
        xds_p = _pad2d(xds, rows_pad, kdpad)
        wds_p = _pad2d(params["wds"][:, :, 0, 0].T, kdpad, cpad).astype(jnp.bfloat16)
        res_arr, sds, qds = _conv_stats(xds_p, wds_p, tm, vmem_limit)
        rsc, rsh = _bn_scale_shift(jnp.sum(sds, axis=(0, 1)),
                                   jnp.sum(qds, axis=(0, 1)),
                                   params["gds"], params["bds"], rows, cout, cpad)
        res_blk = 0
    else:
        assert cin == cout, "identity residual requires in_planes == out_planes"
        assert (ho, wo) == (h, w), "identity residual requires same spatial dims"
        res_arr = _pad2d(x.reshape(rows, cin), rows_pad, cpad)
        rsc = jnp.ones((1, cpad), jnp.float32)
        rsh = jnp.zeros((1, cpad), jnp.float32)
        res_blk = 0

    # ---- bn1 + relu folded into the im2col/cast prep for conv2 (no extra
    #      pallas_call / HBM round trip) ----
    y1 = y1c[:rows, :cout].astype(jnp.float32)
    y1n = jnp.maximum(y1 * sc1[:, :cout] + sh1[:, :cout], 0.0)
    y1_nhwc = y1n.astype(jnp.bfloat16).reshape(n, ho, wo, cout)

    # ---- conv2 (matmul + stats), then fused bn2 + residual-BN + add + relu ----
    xcol2, ho2, wo2 = _im2col(y1_nhwc, kernel_size, 1, padding)
    assert (ho2, wo2) == (ho, wo)
    xcol2_p = _pad2d(xcol2, rows_pad, k2pad)
    w2col = jnp.transpose(params["w2"], (2, 3, 1, 0)).reshape(xcol2.shape[1], cout)
    w2_p = _pad2d(w2col, k2pad, cpad).astype(jnp.bfloat16)
    y2, s2, q2 = _conv_stats(xcol2_p, w2_p, tm, vmem_limit)
    sc2, sh2 = _bn_scale_shift(jnp.sum(s2, axis=(0, 1)),
                               jnp.sum(q2, axis=(0, 1)),
                               params["g2"], params["b2"], rows, cout, cpad)

    out = _bn_res_relu(y2, sc2, sh2, res_arr, res_blk, rsc, rsh, tm, vmem_limit)
    out = out[:rows, :cout].reshape(n, ho, wo, cout)
    return jnp.transpose(out, (0, 3, 1, 2))                            # NCHW


# -------------------------- pure-JAX reference ------------------------------ #

def basic_block_reference(x, params, *, kernel_size, stride, padding):
    del kernel_size

    def conv(inp, wgt, s, p):
        return jax.lax.conv_general_dilated(
            inp, wgt, (s, s), [(p, p), (p, p)],
            dimension_numbers=("NCHW", "OIHW", "NCHW"))

    def bn(inp, g, b):
        mu = jnp.mean(inp, axis=(0, 2, 3), keepdims=True)
        var = jnp.mean(jnp.square(inp - mu), axis=(0, 2, 3), keepdims=True)
        return ((inp - mu) * jax.lax.rsqrt(var + BN_EPS)
                * g.reshape(1, -1, 1, 1) + b.reshape(1, -1, 1, 1))

    out = jax.nn.relu(bn(conv(x, params["w1"], stride, padding),
                         params["g1"], params["b1"]))
    out = bn(conv(out, params["w2"], 1, padding), params["g2"], params["b2"])
    if stride > 1:
        res = bn(conv(x, params["wds"], stride, 0),
                 params["gds"], params["bds"])
    else:
        res = x
    return jax.nn.relu(out + res)


# ----------------------------------- main ----------------------------------- #

if __name__ == "__main__":
    # BasicBlock(in_planes=4, out_planes=8, kernel_size=3, stride=2, padding=1)
    N, CIN, COUT, H, W = 2, 4, 8, 16, 16
    KSIZE, STRIDE, PAD = 3, 2, 1

    key = jax.random.PRNGKey(0)
    ks = jax.random.split(key, 10)
    params = {
        "w1":  0.1 * jax.random.normal(ks[0], (COUT, CIN, KSIZE, KSIZE), jnp.float32),
        "w2":  0.1 * jax.random.normal(ks[1], (COUT, COUT, KSIZE, KSIZE), jnp.float32),
        "wds": 0.1 * jax.random.normal(ks[2], (COUT, CIN, 1, 1), jnp.float32),
        "g1":  1.0 + 0.1 * jax.random.normal(ks[3], (COUT,), jnp.float32),
        "b1":  0.1 * jax.random.normal(ks[4], (COUT,), jnp.float32),
        "g2":  1.0 + 0.1 * jax.random.normal(ks[5], (COUT,), jnp.float32),
        "b2":  0.1 * jax.random.normal(ks[6], (COUT,), jnp.float32),
        "gds": 1.0 + 0.1 * jax.random.normal(ks[7], (COUT,), jnp.float32),
        "bds": 0.1 * jax.random.normal(ks[8], (COUT,), jnp.float32),
    }
    x = jax.random.normal(ks[9], (N, CIN, H, W), jnp.float32)

    out = basic_block_forward(x, params, kernel_size=KSIZE, stride=STRIDE, padding=PAD)
    out = jax.block_until_ready(out)

    ref = basic_block_reference(x, params, kernel_size=KSIZE, stride=STRIDE, padding=PAD)
    assert out.shape == ref.shape == (N, COUT, H // STRIDE, W // STRIDE), out.shape
    # bf16 MXU operands + bf16 intermediates (per the perf guidance) => looser
    # tolerance vs. the f32 reference.
    assert jnp.allclose(out, ref, atol=7.5e-2, rtol=7.5e-2), \
        float(jnp.max(jnp.abs(out - ref)))

    print("KERNEL_OK")
</pallas_src>

<mosaic_0001>
module attributes {stable_mosaic.version = 11 : i64} {
  func.func @_matmul_stats_kernel(%arg0: i32, %arg1: memref<128x128xbf16, #tpu.memory_space<vmem>>, %arg2: memref<128x256xbf16, #tpu.memory_space<vmem>>, %arg3: memref<128x256xbf16, #tpu.memory_space<vmem>>, %arg4: memref<1x8x256xf32, #tpu.memory_space<vmem>>, %arg5: memref<1x8x256xf32, #tpu.memory_space<vmem>>) attributes {dimension_semantics = [#tpu.dimension_semantics<parallel>], iteration_bounds = array<i64: 1>, scalar_prefetch = 0 : i64, scratch_operands = 0 : i64, tpu.core_type = #tpu.core_type<tc>, window_params = [{transform_indices = @transform_0, window_bounds = array<i64: 128, 128>}, {pipeline_mode = #tpu.pipeline_mode<synchronous>, transform_indices = @transform_1, window_bounds = array<i64: 128, 256>}, {transform_indices = @transform_2, window_bounds = array<i64: 128, 256>}, {transform_indices = @transform_3, window_bounds = array<i64: 1, 8, 256>}, {transform_indices = @transform_4, window_bounds = array<i64: 1, 8, 256>}]} {
    %c0 = arith.constant 0 : index
    %c0_0 = arith.constant 0 : index
    %0 = vector.load %arg1[%c0, %c0_0] : memref<128x128xbf16, #tpu.memory_space<vmem>>, vector<128x128xbf16>
    %c0_1 = arith.constant 0 : index
    %c0_2 = arith.constant 0 : index
    %1 = vector.load %arg2[%c0_1, %c0_2] : memref<128x256xbf16, #tpu.memory_space<vmem>>, vector<128x256xbf16>
    %cst = arith.constant dense<0.000000e+00> : vector<128x256xf32>
    %2 = tpu.matmul %0, %1, %cst {dimension_numbers = #tpu.dot_dimension_numbers<[1], [0], [0], [1], [0, 0, 1, 1], [], []>} : vector<128x128xbf16>, vector<128x256xbf16>, vector<128x256xf32> -> vector<128x256xf32>
    %3 = arith.truncf %2 : vector<128x256xf32> to vector<128x256xbf16>
    %c0_3 = arith.constant 0 : index
    %c0_4 = arith.constant 0 : index
    %4 = vector.load %arg3[%c0_3, %c0_4] : memref<128x256xbf16, #tpu.memory_space<vmem>>, vector<128x256xbf16>
    tpu.vector_store %arg3[%c0_3, %c0_4], %3 {strides = array<i32>} : memref<128x256xbf16, #tpu.memory_space<vmem>>, vector<128x256xbf16>,
    %5 = vector.shape_cast %2 : vector<128x256xf32> to vector<16x8x256xf32>
    %cst_5 = arith.constant dense<0.000000e+00> : vector<8x256xf32>
    %6 = vector.multi_reduction <add>, %5, %cst_5 [0] : vector<16x8x256xf32> to vector<8x256xf32>
    %7 = vector.shape_cast %6 : vector<8x256xf32> to vector<1x8x256xf32>
    %c0_6 = arith.constant 0 : index
    %c0_7 = arith.constant 0 : index
    %c0_8 = arith.constant 0 : index
    %8 = vector.load %arg4[%c0_6, %c0_7, %c0_8] : memref<1x8x256xf32, #tpu.memory_space<vmem>>, vector<1x8x256xf32>
    tpu.vector_store %arg4[%c0_6, %c0_7, %c0_8], %7 {strides = array<i32>} : memref<1x8x256xf32, #tpu.memory_space<vmem>>, vector<1x8x256xf32>,
    %9 = arith.mulf %5, %5 : vector<16x8x256xf32>
    %cst_9 = arith.constant dense<0.000000e+00> : vector<8x256xf32>
    %10 = vector.multi_reduction <add>, %9, %cst_9 [0] : vector<16x8x256xf32> to vector<8x256xf32>
    %11 = vector.shape_cast %10 : vector<8x256xf32> to vector<1x8x256xf32>
    %c0_10 = arith.constant 0 : index
    %c0_11 = arith.constant 0 : index
    %c0_12 = arith.constant 0 : index
    %12 = vector.load %arg5[%c0_10, %c0_11, %c0_12] : memref<1x8x256xf32, #tpu.memory_space<vmem>>, vector<1x8x256xf32>
    tpu.vector_store %arg5[%c0_10, %c0_11, %c0_12], %11 {strides = array<i32>} : memref<1x8x256xf32, #tpu.memory_space<vmem>>, vector<1x8x256xf32>,
    return
  }
  func.func @transform_0(%arg0: i32) -> (i32, i32) {
    %c0_i32 = arith.constant 0 : i32
    %c0_i32_0 = arith.constant 0 : i32
    return %arg0, %c0_i32 : i32, i32
  }
  func.func @transform_1(%arg0: i32) -> (i32, i32) {
    %c0_i32 = arith.constant 0 : i32
    %c0_i32_0 = arith.constant 0 : i32
    %c0_i32_1 = arith.constant 0 : i32
    return %c0_i32, %c0_i32_0 : i32, i32
  }
  func.func @transform_2(%arg0: i32) -> (i32, i32) {
    %c0_i32 = arith.constant 0 : i32
    %c0_i32_0 = arith.constant 0 : i32
    return %arg0, %c0_i32 : i32, i32
  }
  func.func @transform_3(%arg0: i32) -> (i32, i32, i32) {
    %c0_i32 = arith.constant 0 : i32
    %c0_i32_0 = arith.constant 0 : i32
    %c0_i32_1 = arith.constant 0 : i32
    return %arg0, %c0_i32, %c0_i32_0 : i32, i32, i32
  }
  func.func @transform_4(%arg0: i32) -> (i32, i32, i32) {
    %c0_i32 = arith.constant 0 : i32
    %c0_i32_0 = arith.constant 0 : i32
    %c0_i32_1 = arith.constant 0 : i32
    return %arg0, %c0_i32, %c0_i32_0 : i32, i32, i32
  }
}

</mosaic_0001>

<bundles_post_ra>
// kernel: tpu_custom_call.1
= control target key start
LH: loop header
LB: loop body
LE: loop exit
PB: predicated region body
PF: predicated region fallthrough
CT: control target
= control target key end

     0   :  { %10 = vsyncpa [#allocation3], 0  ;;  %s1008_s0 = inlined_call_operand.hbm [shape: bf16[128,128], index: 0, kind: input, shape index: {}]   ;;  %s1009_s1 = inlined_call_operand.hbm [shape: bf16[128,256], index: 1, kind: input, shape index: {}]   ;;  %s1010_s2 = inlined_call_operand.hbm [shape: bf16[128,256], index: 2, kind: output, shape index: {0}]   ;;  %s1011_s3 = inlined_call_operand.hbm [shape: f32[1,8,256], index: 3, kind: output, shape index: {1}]   ;;  %s1012_s4 = inlined_call_operand.hbm [shape: f32[1,8,256], index: 4, kind: output, shape index: {2}]  }
   0x1   :  { %11 = vsyncpa [#allocation6], 0 }
   0x2   :  { %12 = vsyncpa [#allocation4], 0 }
   0x3   :  { %13 = vsyncpa [#allocation9], 0  ;;  %s803_s15 = smov [#allocation2]   ;;  %s685_s19 = scalar_lea.hbm %s1008_s0, 1024 }
   0x4   :  { %s19_s16 = sshll.u32 %s803_s15, 4  ;;  %p686_p0 = scmp.ne.s32.totalorder %s1008_s0, %s685_s19  ;;  %s20_s16 = int_to_ptr.vmem [resolvable:$true] %s19_s16 }
   0x5   :  { %p689_p1 = scmp.lt.u32.totalorder %s685_s19, %s1008_s0 }
   0x7   :  { %p691_p2 = pnand %p689_p1, %p686_p0 }
   0x9   :  { %694 = shalt.err (!%p691_p2)
}
   0xa   :  { %s695_s24 = scalar_lea.vmem %s20_s16, 1024  ;;  %p700_p4 = scmp.lt.s32.totalorder %s20_s16, %s20_s16 }
   0xb   :  { %p696_p3 = scmp.ne.s32.totalorder %s20_s16, %s695_s24  ;;  %p701_p5 = scmp.lt.s32.totalorder %s695_s24, %s695_s24 }
   0xd   :  { %p702_p6 = por %p701_p5, %p700_p4 }
   0xf   :  { %p703_p7 = pnand %p702_p6, %p696_p3 }
  0x11   :  { %706 = shalt.err (!%p703_p7)
}
  0x12   :  { %s804_s25 = smov 64   ;;  %s805_s26 = smov 4  }
  0x13   :  { %25 = dma.hbm_to_vmem [thread:$0]  %s1008_s0, 1024, %s20_s16, [#allocation3], %s804_s25, %s804_s25, %s805_s26  }
  0x14   :  { %s806_s29 = smov [#allocation5]   ;;  %s707_s7 = scalar_lea.hbm %s1009_s1, 2048 }
  0x15   :  { %s31_s30 = sshll.u32 %s806_s29, 4  ;;  %p708_p8 = scmp.ne.s32.totalorder %s1009_s1, %s707_s7  ;;  %s32_s30 = int_to_ptr.vmem [resolvable:$true] %s31_s30 }
  0x16   :  { %p711_p9 = scmp.lt.u32.totalorder %s707_s7, %s1009_s1 }
  0x18   :  { %p713_p10 = pnand %p711_p9, %p708_p8 }
  0x1a   :  { %716 = shalt.err (!%p713_p10)
}
  0x1b   :  { %s717_s12 = scalar_lea.vmem %s32_s30, 2048  ;;  %p722_p12 = scmp.lt.s32.totalorder %s32_s30, %s32_s30 }
  0x1c   :  { %p718_p11 = scmp.ne.s32.totalorder %s32_s30, %s717_s12  ;;  %p723_p13 = scmp.lt.s32.totalorder %s717_s12, %s717_s12 }
  0x1e   :  { %p724_p0 = por %p723_p13, %p722_p12 }
  0x20   :  { %p725_p1 = pnand %p724_p0, %p718_p11 }
  0x22   :  { %728 = shalt.err (!%p725_p1)
}
  0x23   :  { %s807_s0 = smov 128   ;;  %s808_s13 = smov 8  }
  0x24   :  { %37 = dma.hbm_to_vmem [thread:$0]  %s1009_s1, 2048, %s32_s30, [#allocation6], %s807_s0, %s807_s0, %s808_s13  }
  0x25   :  { %795 = dma.done.wait [#allocation3], 1024  }
  0x26   :  { %796 = vsyncadd [#allocation3], 4294966272 }
  0x27   :  { %797 = dma.done.wait [#allocation6], 2048  }
  0x28   :  { %798 = vsyncadd [#allocation6], 4294965248  ;;  %v809_v0 = vmov 0   ;;  %v653_v1 = vld [vmem:[#allocation5 + $0x4] ss:$8 sps:$4 sm:$0xff]   ;;  %v680_v21 = vld [vmem:[#allocation2 + $0x10] sm:$0xff]  }
  0x29   :  { %237 = vmatprep.mubr.bf16.mxu0 %v809_v0  ;;  %277 = vmatprep.mubr.bf16.mxu1 %v809_v0  ;;  %v655_v2 = vld [vmem:[#allocation5] ss:$8 sps:$4 sm:$0xff]   ;;  %v656_v3 = vld [vmem:[#allocation5 + $0x14] ss:$8 sps:$4 sm:$0xff]   ;;  %v658_v4 = vld [vmem:[#allocation5 + $0x10] ss:$8 sps:$4 sm:$0xff]  }
  0x2a   :  { %205 = vmatprep.subr.bf16.mxu0 %v653_v1  ;;  %627 = vmatprep.subr.bf16.mxu1 %v653_v1  ;;  %v659_v5 = vld [vmem:[#allocation5 + $0x24] ss:$8 sps:$4 sm:$0xff]   ;;  %v661_v6 = vld [vmem:[#allocation5 + $0x20] ss:$8 sps:$4 sm:$0xff]   ;;  %v662_v7 = vld [vmem:[#allocation5 + $0x34] ss:$8 sps:$4 sm:$0xff]  }
  0x2b   :  { %206 = vmatpush1.bf16.msra.mxu0 %v655_v2  ;;  %635 = vmatpush1.bf16.msra.mxu1 %v655_v2  ;;  %v664_v8 = vld [vmem:[#allocation5 + $0x30] ss:$8 sps:$4 sm:$0xff]   ;;  %v665_v9 = vld [vmem:[#allocation5 + $0x44] ss:$8 sps:$4 sm:$0xff]   ;;  %v667_v10 = vld [vmem:[#allocation5 + $0x40] ss:$8 sps:$4 sm:$0xff]  }
  0x2c   :  { %207 = vmatprep.subr.bf16.mxu0 %v656_v3  ;;  %628 = vmatprep.subr.bf16.mxu1 %v656_v3  ;;  %v668_v11 = vld [vmem:[#allocation5 + $0x54] ss:$8 sps:$4 sm:$0xff]   ;;  %v670_v12 = vld [vmem:[#allocation5 + $0x50] ss:$8 sps:$4 sm:$0xff]   ;;  %v671_v13 = vld [vmem:[#allocation5 + $0x64] ss:$8 sps:$4 sm:$0xff]  }
  0x2d   :  { %v673_v14 = vld [vmem:[#allocation5 + $0x60] ss:$8 sps:$4 sm:$0xff]   ;;  %v674_v15 = vld [vmem:[#allocation5 + $0x74] ss:$8 sps:$4 sm:$0xff]   ;;  %v676_v16 = vld [vmem:[#allocation5 + $0x70] ss:$8 sps:$4 sm:$0xff]  }
  0x2e   :  { %v677_v17 = vld [vmem:[#allocation2] sm:$0xff]   ;;  %v678_v19 = vld [vmem:[#allocation2 + $0x8] sm:$0xff]   ;;  %v683_v22 = vld [vmem:[#allocation2 + $0x30] sm:$0xff]   ;;  %s810_s1 = smov [#allocation7]  }
  0x2f   :  { %208 = vmatpush1.bf16.msra.mxu0 %v658_v4  ;;  %636 = vmatpush1.bf16.msra.mxu1 %v658_v4  ;;  %v679_v18 = vld [vmem:[#allocation2 + $0x20] sm:$0xff]   ;;  %v681_v20 = vld [vmem:[#allocation2 + $0x28] sm:$0xff]   ;;  %v682_v23 = vld [vmem:[#allocation2 + $0x18] sm:$0xff]   ;;  %s531_s16 = sshll.u32 %s810_s1, 4  ;;  %s532_s16 = int_to_ptr.vmem [resolvable:$true] %s531_s16 }
  0x30   :  { %209 = vmatprep.subr.bf16.mxu0 %v659_v5  ;;  %629 = vmatprep.subr.bf16.mxu1 %v659_v5  ;;  %v684_v24 = vld [vmem:[#allocation2 + $0x38] sm:$0xff]   ;;  %s729_s17 = scalar_lea.vmem %s532_s16, 2048  ;;  %p734_p3 = scmp.lt.s32.totalorder %s532_s16, %s532_s16 }
  0x31   :  { %p730_p2 = scmp.ne.s32.totalorder %s532_s16, %s729_s17  ;;  %p735_p4 = scmp.lt.s32.totalorder %s729_s17, %s729_s17 }
  0x33   :  { %210 = vmatpush1.bf16.msra.mxu0 %v661_v6  ;;  %637 = vmatpush1.bf16.msra.mxu1 %v661_v6  ;;  %p736_p5 = por %p735_p4, %p734_p3 }
  0x34   :  { %211 = vmatprep.subr.bf16.mxu0 %v662_v7  ;;  %630 = vmatprep.subr.bf16.mxu1 %v662_v7 }
  0x35   :  { %p737_p6 = pnand %p736_p5, %p730_p2 }
  0x37   :  { %212 = vmatpush1.bf16.msra.mxu0 %v664_v8  ;;  %638 = vmatpush1.bf16.msra.mxu1 %v664_v8 }
  0x38   :  { %213 = vmatprep.subr.bf16.mxu0 %v665_v9  ;;  %631 = vmatprep.subr.bf16.mxu1 %v665_v9 }
  0x3b   :  { %214 = vmatpush1.bf16.msra.mxu0 %v667_v10  ;;  %639 = vmatpush1.bf16.msra.mxu1 %v667_v10 }
  0x3c   :  { %215 = vmatprep.subr.bf16.mxu0 %v668_v11  ;;  %632 = vmatprep.subr.bf16.mxu1 %v668_v11 }
  0x3f   :  { %216 = vmatpush1.bf16.msra.mxu0 %v670_v12  ;;  %640 = vmatpush1.bf16.msra.mxu1 %v670_v12 }
  0x40   :  { %217 = vmatprep.subr.bf16.mxu0 %v671_v13  ;;  %633 = vmatprep.subr.bf16.mxu1 %v671_v13 }
  0x43   :  { %218 = vmatpush1.bf16.msra.mxu0 %v673_v14  ;;  %641 = vmatpush1.bf16.msra.mxu1 %v673_v14 }
  0x44   :  { %219 = vmatprep.subr.bf16.mxu0 %v674_v15  ;;  %634 = vmatprep.subr.bf16.mxu1 %v674_v15 }
  0x47   :  { %220 = vmatpush1.bf16.msra.mxu0 %v676_v16  ;;  %642 = vmatpush1.bf16.msra.mxu1 %v676_v16 }
  0x4a   :  { %238 = vmatmul.mubr.bf16.vlgmr.msra.gmra.mrb[0].mxu0 %v677_v17  ;;  %278 = vmatmul.mubr.bf16.vlgmr.msra.gmra.mrb[0].mxu1 %v679_v18 }
  0x4b   :  { %247 = vmatprep.mubr.bf16.mxu0 %v809_v0  ;;  %287 = vmatprep.mubr.bf16.mxu1 %v809_v0 }
  0x52   :  { %248 = vmatmul.mubr.bf16.gmra.mrb[4].mxu0 %v678_v19  ;;  %288 = vmatmul.mubr.bf16.gmra.mrb[4].mxu1 %v681_v20 }
  0x53   :  { %257 = vmatprep.mubr.bf16.mxu0 %v809_v0  ;;  %297 = vmatprep.mubr.bf16.mxu1 %v809_v0 }
  0x5a   :  { %258 = vmatmul.mubr.bf16.gmra.mrb[8].mxu0 %v680_v21  ;;  %298 = vmatmul.mubr.bf16.gmra.mrb[8].mxu1 %v683_v22 }
  0x5b   :  { %267 = vmatprep.mubr.bf16.mxu0 %v809_v0  ;;  %307 = vmatprep.mubr.bf16.mxu1 %v809_v0 }
  0x62   :  { %268 = vmatmul.mubr.bf16.gmra.mrb[12].mxu0 %v682_v23  ;;  %308 = vmatmul.mubr.bf16.gmra.mrb[12].mxu1 %v684_v24 }
 0x11d   :  { %v239_v25 = vpop.f32.mrb[0].mxu0  ;;  %v873_v26 = vpop.f32.mrb[0].mxu1 }
 0x11e   :  { %v241_v27 = vpop.f32.mrb[1].mxu0  ;;  %v875_v28 = vpop.f32.mrb[1].mxu1  ;;  %v462_v33 = vmul.f32 %v239_v25, %v239_v25 }
 0x11f   :  { %v611_v29 = vpack.c.bf16 %v241_v27, %v239_v25  ;;  %v243_v30 = vpop.f32.mrb[2].mxu0  ;;  %v619_v31 = vpack.c.bf16 %v875_v28, %v873_v26  ;;  %v879_v32 = vpop.f32.mrb[2].mxu1  ;;  %v463_v34 = vmul.f32 %v241_v27, %v241_v27 }
 0x120   :  { %v430_v35 = vadd.f32 %v243_v30, %v239_v25  ;;  %v464_v36 = vmul.f32 %v243_v30, %v243_v30  ;;  %v245_v37 = vpop.f32.mrb[3].mxu0  ;;  %v881_v38 = vpop.f32.mrb[3].mxu1 }
 0x121   :  { %414 = vst [vmem:[#allocation7] sm:$0xff] %v611_v29  ;;  %v612_v39 = vpack.c.bf16 %v245_v37, %v243_v30  ;;  %v445_v40 = vadd.f32 %v245_v37, %v241_v27  ;;  %v465_v41 = vmul.f32 %v245_v37, %v245_v37  ;;  %422 = vst [vmem:[#allocation7 + $0x40] sm:$0xff] %v619_v31 }
 0x122   :  { %v620_v42 = vpack.c.bf16 %v881_v38, %v879_v32  ;;  %v494_v43 = vadd.f32 %v464_v36, %v462_v33 }
 0x123   :  { %415 = vst [vmem:[#allocation7 + $0x8] sm:$0xff] %v612_v39  ;;  %v509_v44 = vadd.f32 %v465_v41, %v463_v34 }
 0x124   :  { %423 = vst [vmem:[#allocation7 + $0x48] sm:$0xff] %v620_v42 }
 0x125   :  { %v249_v45 = vpop.f32.mrb[4].mxu0  ;;  %v885_v46 = vpop.f32.mrb[4].mxu1 }
 0x126   :  { %v431_v47 = vadd.f32 %v430_v35, %v249_v45  ;;  %v466_v48 = vmul.f32 %v249_v45, %v249_v45  ;;  %v251_v49 = vpop.f32.mrb[5].mxu0  ;;  %v887_v50 = vpop.f32.mrb[5].mxu1 }
 0x127   :  { %v613_v51 = vpack.c.bf16 %v251_v49, %v249_v45  ;;  %v446_v52 = vadd.f32 %v445_v40, %v251_v49  ;;  %v467_v53 = vmul.f32 %v251_v49, %v251_v49  ;;  %v253_v54 = vpop.f32.mrb[6].mxu0  ;;  %v621_v55 = vpack.c.bf16 %v887_v50, %v885_v46  ;;  %v891_v56 = vpop.f32.mrb[6].mxu1 }
 0x128   :  { %v495_v57 = vadd.f32 %v494_v43, %v466_v48  ;;  %v432_v58 = vadd.f32 %v431_v47, %v253_v54  ;;  %v468_v59 = vmul.f32 %v253_v54, %v253_v54  ;;  %v255_v60 = vpop.f32.mrb[7].mxu0  ;;  %v893_v61 = vpop.f32.mrb[7].mxu1 }
 0x129   :  { %416 = vst [vmem:[#allocation7 + $0x10] sm:$0xff] %v613_v51  ;;  %v510_v62 = vadd.f32 %v509_v44, %v467_v53  ;;  %v614_v63 = vpack.c.bf16 %v255_v60, %v253_v54  ;;  %v447_v0 = vadd.f32 %v446_v52, %v255_v60  ;;  %v469_v1 = vmul.f32 %v255_v60, %v255_v60 }
 0x12a   :  { %424 = vst [vmem:[#allocation7 + $0x50] sm:$0xff] %v621_v55  ;;  %v496_v2 = vadd.f32 %v495_v57, %v468_v59  ;;  %v622_v3 = vpack.c.bf16 %v893_v61, %v891_v56  ;;  %v478_v57 = vmul.f32 %v873_v26, %v873_v26 }
 0x12b   :  { %417 = vst [vmem:[#allocation7 + $0x18] sm:$0xff] %v614_v63  ;;  %v511_v4 = vadd.f32 %v510_v62, %v469_v1  ;;  %v479_v62 = vmul.f32 %v875_v28, %v875_v28  ;;  %v480_v1 = vmul.f32 %v879_v32, %v879_v32 }
 0x12c   :  { %425 = vst [vmem:[#allocation7 + $0x58] sm:$0xff] %v622_v3 }
 0x12d   :  { %v259_v5 = vpop.f32.mrb[8].mxu0  ;;  %v897_v6 = vpop.f32.mrb[8].mxu1 }
 0x12e   :  { %v433_v7 = vadd.f32 %v432_v58, %v259_v5  ;;  %v470_v8 = vmul.f32 %v259_v5, %v259_v5  ;;  %v261_v9 = vpop.f32.mrb[9].mxu0  ;;  %v899_v10 = vpop.f32.mrb[9].mxu1 }
 0x12f   :  { %v615_v11 = vpack.c.bf16 %v261_v9, %v259_v5  ;;  %v448_v12 = vadd.f32 %v447_v0, %v261_v9  ;;  %v471_v13 = vmul.f32 %v261_v9, %v261_v9  ;;  %v263_v14 = vpop.f32.mrb[10].mxu0  ;;  %v623_v15 = vpack.c.bf16 %v899_v10, %v897_v6  ;;  %v903_v16 = vpop.f32.mrb[10].mxu1 }
 0x130   :  { %v497_v17 = vadd.f32 %v496_v2, %v470_v8  ;;  %v434_v18 = vadd.f32 %v433_v7, %v263_v14  ;;  %v472_v19 = vmul.f32 %v263_v14, %v263_v14  ;;  %v265_v20 = vpop.f32.mrb[11].mxu0  ;;  %v905_v21 = vpop.f32.mrb[11].mxu1 }
 0x131   :  { %418 = vst [vmem:[#allocation7 + $0x20] sm:$0xff] %v615_v11  ;;  %v512_v22 = vadd.f32 %v511_v4, %v471_v13  ;;  %v616_v23 = vpack.c.bf16 %v265_v20, %v263_v14  ;;  %v449_v24 = vadd.f32 %v448_v12, %v265_v20  ;;  %v473_v25 = vmul.f32 %v265_v20, %v265_v20 }
 0x132   :  { %426 = vst [vmem:[#allocation7 + $0x60] sm:$0xff] %v623_v15  ;;  %v498_v27 = vadd.f32 %v497_v17, %v472_v19  ;;  %v624_v29 = vpack.c.bf16 %v905_v21, %v903_v16 }
 0x133   :  { %419 = vst [vmem:[#allocation7 + $0x28] sm:$0xff] %v616_v23  ;;  %v513_v30 = vadd.f32 %v512_v22, %v473_v25 }
 0x134   :  { %427 = vst [vmem:[#allocation7 + $0x68] sm:$0xff] %v624_v29 }
 0x135   :  { %v269_v31 = vpop.f32.mrb[12].mxu0  ;;  %v909_v33 = vpop.f32.mrb[12].mxu1 }
 0x136   :  { %v435_v34 = vadd.f32 %v434_v18, %v269_v31  ;;  %v474_v35 = vmul.f32 %v269_v31, %v269_v31  ;;  %v271_v36 = vpop.f32.mrb[13].mxu0  ;;  %v911_v37 = vpop.f32.mrb[13].mxu1 }
 0x137   :  { %v617_v39 = vpack.c.bf16 %v271_v36, %v269_v31  ;;  %v450_v40 = vadd.f32 %v449_v24, %v271_v36  ;;  %v475_v41 = vmul.f32 %v271_v36, %v271_v36  ;;  %v273_v42 = vpop.f32.mrb[14].mxu0  ;;  %v625_v43 = vpack.c.bf16 %v911_v37, %v909_v33  ;;  %v915_v44 = vpop.f32.mrb[14].mxu1 }
 0x138   :  { %v499_v45 = vadd.f32 %v498_v27, %v474_v35  ;;  %v436_v47 = vadd.f32 %v435_v34, %v273_v42  ;;  %v476_v48 = vmul.f32 %v273_v42, %v273_v42  ;;  %v275_v49 = vpop.f32.mrb[15].mxu0  ;;  %v917_v51 = vpop.f32.mrb[15].mxu1 }
 0x139   :  { %420 = vst [vmem:[#allocation7 + $0x30] sm:$0xff] %v617_v39  ;;  %v514_v52 = vadd.f32 %v513_v30, %v475_v41  ;;  %v618_v53 = vpack.c.bf16 %v275_v49, %v273_v42  ;;  %v451_v54 = vadd.f32 %v450_v40, %v275_v49  ;;  %v477_v55 = vmul.f32 %v275_v49, %v275_v49 }
 0x13a   :  { %428 = vst [vmem:[#allocation7 + $0x70] sm:$0xff] %v625_v43  ;;  %v437_v58 = vadd.f32 %v436_v47, %v873_v26  ;;  %v500_v59 = vadd.f32 %v499_v45, %v476_v48  ;;  %v626_v60 = vpack.c.bf16 %v917_v51, %v915_v44  ;;  %v481_v26 = vmul.f32 %v881_v38, %v881_v38 }
 0x13b   :  { %421 = vst [vmem:[#allocation7 + $0x38] sm:$0xff] %v618_v53  ;;  %v452_v63 = vadd.f32 %v451_v54, %v875_v28  ;;  %v515_v0 = vadd.f32 %v514_v52, %v477_v55 }
 0x13c   :  { %v438_v2 = vadd.f32 %v437_v58, %v879_v32  ;;  %v501_v3 = vadd.f32 %v500_v59, %v478_v57  ;;  %429 = vst [vmem:[#allocation7 + $0x78] sm:$0xff] %v626_v60 }
 0x13d   :  { %v453_v4 = vadd.f32 %v452_v63, %v881_v38  ;;  %v516_v5 = vadd.f32 %v515_v0, %v479_v62 }
 0x13e   :  { %740 = shalt.err (!%p737_p6)
}
 0x13f   :  { %s741_s20 = scalar_lea.hbm %s1010_s2, 2048 }
 0x140   :  { %p742_p7 = scmp.ne.s32.totalorder %s1010_s2, %s741_s20  ;;  %p745_p8 = scmp.lt.u32.totalorder %s741_s20, %s1010_s2 }
 0x142   :  { %p747_p9 = pnand %p745_p8, %p742_p7 }
 0x144   :  { %750 = shalt.err (!%p747_p9)
}
 0x145   :  { %537 = dma.vmem_to_hbm [thread:$0]  %s532_s16, 2048, %s1010_s2, [#allocation4], %s807_s0, %s807_s0, %s808_s13   ;;  %v482_v28 = vmul.f32 %v885_v46, %v885_v46  ;;  %v502_v32 = vadd.f32 %v501_v3, %v480_v1  ;;  %v439_v38 = vadd.f32 %v438_v2, %v885_v46  ;;  %v483_v7 = vmul.f32 %v887_v50, %v887_v50 }
 0x146   :  { %v517_v8 = vadd.f32 %v516_v5, %v481_v26  ;;  %v454_v9 = vadd.f32 %v453_v4, %v887_v50  ;;  %v484_v11 = vmul.f32 %v891_v56, %v891_v56  ;;  %v485_v14 = vmul.f32 %v893_v61, %v893_v61  ;;  %s811_s2 = smov [#allocation8]   ;;  %s812_s28 = smov [#allocation10]  }
 0x147   :  { %v440_v12 = vadd.f32 %v439_v38, %v891_v56  ;;  %v503_v13 = vadd.f32 %v502_v32, %v482_v28  ;;  %v486_v18 = vmul.f32 %v897_v6, %v897_v6  ;;  %v487_v20 = vmul.f32 %v899_v10, %v899_v10  ;;  %s544_s27 = sshll.u32 %s811_s2, 4  ;;  %s554_s29 = sshll.u32 %s812_s28, 4  ;;  %s545_s27 = int_to_ptr.vmem [resolvable:$true] %s544_s27  ;;  %s555_s29 = int_to_ptr.vmem [resolvable:$true] %s554_s29 }
 0x148   :  { %v455_v15 = vadd.f32 %v454_v9, %v893_v61  ;;  %v518_v17 = vadd.f32 %v517_v8, %v483_v7  ;;  %v488_v24 = vmul.f32 %v903_v16, %v903_v16  ;;  %v490_v61 = vmul.f32 %v909_v33, %v909_v33  ;;  %s751_s30 = scalar_lea.vmem %s545_s27, 256  ;;  %p756_p11 = scmp.lt.s32.totalorder %s545_s27, %s545_s27 }
 0x149   :  { %v441_v46 = vadd.f32 %v440_v12, %v897_v6  ;;  %v504_v19 = vadd.f32 %v503_v13, %v484_v11  ;;  %v489_v6 = vmul.f32 %v905_v21, %v905_v21  ;;  %v491_v29 = vmul.f32 %v911_v37, %v911_v37  ;;  %p752_p10 = scmp.ne.s32.totalorder %s545_s27, %s751_s30  ;;  %p757_p12 = scmp.lt.s32.totalorder %s751_s30, %s751_s30 }
 0x14a   :  { %v456_v50 = vadd.f32 %v455_v15, %v899_v10  ;;  %v519_v22 = vadd.f32 %v518_v17, %v485_v14  ;;  %v492_v36 = vmul.f32 %v915_v44, %v915_v44  ;;  %v493_v40 = vmul.f32 %v917_v51, %v917_v51 }
 0x14b   :  { %v505_v56 = vadd.f32 %v504_v19, %v486_v18  ;;  %v442_v23 = vadd.f32 %v441_v46, %v903_v16  ;;  %p758_p13 = por %p757_p12, %p756_p11 }
 0x14c   :  { %v520_v25 = vadd.f32 %v519_v22, %v487_v20  ;;  %v457_v27 = vadd.f32 %v456_v50, %v905_v21 }
 0x14d   :  { %v506_v10 = vadd.f32 %v505_v56, %v488_v24  ;;  %v443_v30 = vadd.f32 %v442_v23, %v909_v33  ;;  %p759_p0 = pnand %p758_p13, %p752_p10 }
 0x14e   :  { %v521_v31 = vadd.f32 %v520_v25, %v489_v6  ;;  %v458_v16 = vadd.f32 %v457_v27, %v911_v37 }
 0x14f   :  { %v507_v34 = vadd.f32 %v506_v10, %v490_v61  ;;  %v444_v35 = vadd.f32 %v443_v30, %v915_v44 }
 0x150   :  { %v522_v21 = vadd.f32 %v521_v31, %v491_v29  ;;  %v459_v39 = vadd.f32 %v458_v16, %v917_v51 }
 0x151   :  { %v508_v33 = vadd.f32 %v507_v34, %v492_v36  ;;  %460 = vst [vmem:[#allocation8] sm:$0xff] %v444_v35 }
 0x152   :  { %v523_v41 = vadd.f32 %v522_v21, %v493_v40  ;;  %461 = vst [vmem:[#allocation8 + $0x8] sm:$0xff] %v459_v39 }
 0x153   :  { %524 = vst [vmem:[#allocation10] sm:$0xff] %v508_v33 }
 0x154   :  { %762 = shalt.err (!%p759_p0)
}
 0x155   :  { %s763_s7 = scalar_lea.hbm %s1011_s3, 256 }
 0x156   :  { %p764_p1 = scmp.ne.s32.totalorder %s1011_s3, %s763_s7  ;;  %p767_p2 = scmp.lt.u32.totalorder %s763_s7, %s1011_s3 }
 0x158   :  { %p769_p3 = pnand %p767_p2, %p764_p1 }
 0x15a   :  { %772 = shalt.err (!%p769_p3)
}
 0x15b   :  { %547 = dma.vmem_to_hbm [thread:$0]  %s545_s27, 256, %s1011_s3, [#allocation9]   ;;  %525 = vst [vmem:[#allocation10 + $0x8] sm:$0xff] %v523_v41 }
 0x15c   :  { %s773_s13 = scalar_lea.vmem %s555_s29, 256  ;;  %p778_p5 = scmp.lt.s32.totalorder %s555_s29, %s555_s29 }
 0x15d   :  { %p774_p4 = scmp.ne.s32.totalorder %s555_s29, %s773_s13  ;;  %p779_p6 = scmp.lt.s32.totalorder %s773_s13, %s773_s13 }
 0x15f   :  { %p780_p7 = por %p779_p6, %p778_p5 }
 0x161   :  { %p781_p8 = pnand %p780_p7, %p774_p4 }
 0x163   :  { %784 = shalt.err (!%p781_p8)
}
 0x164   :  { %s785_s1 = scalar_lea.hbm %s1012_s4, 256 }
 0x165   :  { %p786_p9 = scmp.ne.s32.totalorder %s1012_s4, %s785_s1  ;;  %p789_p10 = scmp.lt.u32.totalorder %s785_s1, %s1012_s4 }
 0x167   :  { %p791_p11 = pnand %p789_p10, %p786_p9 }
 0x169   :  { %794 = shalt.err (!%p791_p11)
}
 0x16a   :  { %557 = dma.vmem_to_hbm [thread:$0]  %s555_s29, 256, %s1012_s4, [#allocation9]  }
 0x16b   :  { %799 = dma.done.wait [#allocation4], 2048  }
 0x16c   :  { %800 = vsyncadd [#allocation4], 4294965248 }
 0x16d   :  { %801 = dma.done.wait [#allocation9], 512  }
 0x16e   :  { %802 = vsyncadd [#allocation9], 4294966784 }
 0x16f   :  { %567 = vsyncpa [#allocation3], 1 }
 0x170   :  { %568 = vsyncpa [#allocation6], 1 }
 0x171   :  { %569 = vsyncpa [#allocation4], 1 }
 0x172   :  { %570 = vsyncpa [#allocation9], 1 }

</bundles_post_ra>
